<compile_context>
chip_gen: v5e
topology: v5e:2x2
jax: 0.10.0
libtpu: 0.0.40
codegen_flags: <defaults>
</compile_context>

<pallas_src>
import functools
import math

import jax
import jax.numpy as jnp
from jax import lax
from jax.experimental import pallas as pl
from jax.experimental.pallas import tpu as pltpu


# ----------------------------------------------------------------------------
# Sizing helpers
# ----------------------------------------------------------------------------
def _cdiv(a, b):
    return -(-a // b)


def _round_up(x, m):
    return _cdiv(x, m) * m


def _vmem_budget():
    """Return (pipelined-buffer budget bytes, vmem_limit_bytes), per generation."""
    phys = 64 * 1024 * 1024            # conservative default = v7x per-TC VMEM
    try:
        phys = int(pltpu.get_tpu_info().vmem_capacity_bytes)
    except Exception:
        pass
    if phys >= 100 * 1024 * 1024:      # v5e / v6e: 128 MiB physical VMEM
        return 56 * 1024 * 1024, 98 * 1024 * 1024
    return 24 * 1024 * 1024, 46 * 1024 * 1024


def _pick_hw_tiling(hw, per_col_bytes, fixed_bytes, budget_bytes):
    """Pick a lane (HW) tile width (multiple of 128) under a VMEM byte budget."""
    avail = max(budget_bytes - fixed_bytes, per_col_bytes * 128)
    max_cols = max(128, (avail // per_col_bytes) // 128 * 128)
    n128 = _cdiv(hw, 128)
    chunks_cap = max(1, max_cols // 128)
    ntiles = _cdiv(n128, chunks_cap)
    chunks_per_tile = _cdiv(n128, ntiles)
    thw = chunks_per_tile * 128
    n_chunks = _cdiv(hw, thw)
    return thw, n_chunks


# ----------------------------------------------------------------------------
# Kernels
# ----------------------------------------------------------------------------
def _accumulate(acc_ref, diff, *, thw, hw_valid, n_inner, needs_mask):
    """acc[c, 0] += sum_lanes diff[c, :]^2, masking ragged / duplicated tiles."""
    def _acc(d):
        acc_ref[...] += jnp.sum(d * d, axis=-1, keepdims=True)

    if not needs_mask:
        _acc(diff)
        return

    # Global (unclamped) HW tile index; duplicated overflow tiles map past HW
    # and therefore mask to zero contribution.
    t = pl.program_id(1) * n_inner + pl.program_id(2)
    start = t * thw

    @pl.when(start + thw <= hw_valid)        # fully valid tile: no mask cost
    def _():
        _acc(diff)

    @pl.when(start + thw > hw_valid)         # ragged / duplicated tile
    def _():
        col = lax.broadcasted_iota(jnp.int32, diff.shape, diff.ndim - 1)
        _acc(jnp.where(start + col < hw_valid, diff, 0.0))


def _fea_align_kernel(xs_ref, w_ref, b_ref, xt_ref, out_ref, acc_ref,
                      *, thw, hw_valid, n_inner, needs_mask):
    """aligned = W @ Xs + b ; acc += rowwise sum((aligned - Xt)^2)."""
    j = pl.program_id(2)

    @pl.when(j == 0)
    def _():
        acc_ref[...] = jnp.zeros_like(acc_ref)

    xs = xs_ref[0].astype(jnp.float32)                         # (Cs, thw)
    aligned = jnp.dot(w_ref[...], xs,
                      preferred_element_type=jnp.float32)      # (Ct, thw) on MXU
    diff = (aligned + b_ref[...]) - xt_ref[0].astype(jnp.float32)

    _accumulate(acc_ref, diff, thw=thw, hw_valid=hw_valid,
                n_inner=n_inner, needs_mask=needs_mask)

    @pl.when(j == pl.num_programs(2) - 1)
    def _():
        total = jnp.sum(acc_ref[...])
        out_ref[...] = jnp.full(out_ref.shape, total, dtype=out_ref.dtype)


def _fea_mse_kernel(xs_ref, xt_ref, out_ref, acc_ref,
                    *, thw, hw_valid, n_inner, needs_mask):
    """acc += rowwise sum((Xs - Xt)^2)  (equal channel counts, no align conv)."""
    j = pl.program_id(2)

    @pl.when(j == 0)
    def _():
        acc_ref[...] = jnp.zeros_like(acc_ref)

    diff = xs_ref[0].astype(jnp.float32) - xt_ref[0].astype(jnp.float32)

    _accumulate(acc_ref, diff, thw=thw, hw_valid=hw_valid,
                n_inner=n_inner, needs_mask=needs_mask)

    @pl.when(j == pl.num_programs(2) - 1)
    def _():
        total = jnp.sum(acc_ref[...])
        out_ref[...] = jnp.full(out_ref.shape, total, dtype=out_ref.dtype)


# ----------------------------------------------------------------------------
# Wrapper (the FeaLoss "module")
# ----------------------------------------------------------------------------
class FeaLossPallas:
    """Pallas port of mmpose FeaLoss.

    If student_channels != teacher_channels, a 1x1 Conv2d (weight (Ct, Cs),
    bias (Ct,)) aligns the student features before the sum-MSE.
    """

    def __init__(self, student_channels, teacher_channels, alpha_fea=7e-05,
                 key=jax.random.PRNGKey(42)):
        self.alpha_fea = float(alpha_fea)
        self.student_channels = int(student_channels)
        self.teacher_channels = int(teacher_channels)
        if teacher_channels != student_channels:
            kw, kb = jax.random.split(key)
            # TODO(synk): synthetic Conv2d init (kaiming-uniform bound); a real
            # distillation run would load trained align-conv weights here.
            bound = 1.0 / math.sqrt(student_channels)   # 1x1 kernel fan-in
            # Conv2d weight (Ct, Cs, 1, 1) stored as (Ct, Cs); bias as (Ct, 1).
            self.w = jax.random.uniform(
                kw, (teacher_channels, student_channels),
                minval=-bound, maxval=bound, dtype=jnp.float32)
            self.b = jax.random.uniform(
                kb, (teacher_channels, 1),
                minval=-bound, maxval=bound, dtype=jnp.float32)
        else:
            self.w = None
            self.b = None

    def __call__(self, preds_S, preds_T):
        """preds_S: (N, Cs, H, W), preds_T: (N, Ct, H, W)."""
        N, Cs, H, W = preds_S.shape
        Nt, Ct, Ht, Wt = preds_T.shape
        assert (N, H, W) == (Nt, Ht, Wt)
        assert Cs == self.student_channels and Ct == self.teacher_channels

        HW = H * W
        # Zero-copy reshape NCHW -> (N, C, HW); no transpose, no padding copy.
        xs = preds_S.reshape(N, Cs, HW)
        xt = preds_T.reshape(N, Ct, HW)

        budget, vmem_limit = _vmem_budget()

        # Per-lane-column VMEM bytes (double-buffered input blocks), with
        # sublane padding of the channel axis (8 rows for f32, 16 for bf16, ...).
        def _sub_rows(c, dt):
            return _round_up(c, max(8, 32 // jnp.dtype(dt).itemsize))

        per_col = (2 * _sub_rows(Cs, xs.dtype) * jnp.dtype(xs.dtype).itemsize
                   + 2 * _sub_rows(Ct, xt.dtype) * jnp.dtype(xt.dtype).itemsize)

        ct8 = _round_up(Ct, 8)
        acc_bytes = ct8 * 128 * 4
        out_bytes = 2 * 8 * 128 * 4
        if self.w is not None:
            fixed = (2 * ct8 * _round_up(Cs, 128) * 4     # weight (double-buffered)
                     + 2 * ct8 * 128 * 4                  # bias
                     + acc_bytes + out_bytes)
        else:
            fixed = acc_bytes + out_bytes

        thw, n_chunks = _pick_hw_tiling(HW, per_col, fixed, budget)

        # Megacore (v7x): if the batch alone cannot feed two TensorCores,
        # split the HW tiles over a second "parallel" grid axis.
        n_outer = 2 if (N == 1 and n_chunks >= 2) else 1
        n_inner = _cdiv(n_chunks, n_outer)
        needs_mask = (n_outer * n_inner * thw != HW)

        def hw_idx(n, o, j):
            t = o * n_inner + j
            if n_outer > 1:
                # Duplicated overflow tiles clamp to the last valid block; the
                # in-kernel mask zeroes their contribution.
                t = jnp.minimum(t, n_chunks - 1)
            return (n, 0, t)

        grid = (N, n_outer, n_inner)
        # One lane-dense (1, 128) partial-sum block per (batch, outer-chunk).
        out_shape = jax.ShapeDtypeStruct((N, n_outer, 1, 128), jnp.float32)
        out_spec = pl.BlockSpec((1, 1, 1, 128), lambda n, o, j: (n, o, 0, 0))
        compiler_params = pltpu.CompilerParams(
            dimension_semantics=("parallel", "parallel", "arbitrary"),
            vmem_limit_bytes=vmem_limit,
        )

        if self.w is not None:
            kernel = functools.partial(
                _fea_align_kernel, thw=thw, hw_valid=HW,
                n_inner=n_inner, needs_mask=needs_mask)
            partial_sums = pl.pallas_call(
                kernel,
                out_shape=out_shape,
                grid_spec=pltpu.PrefetchScalarGridSpec(
                    num_scalar_prefetch=0,
                    grid=grid,
                    in_specs=[
                        pl.BlockSpec((1, Cs, thw), hw_idx),
                        pl.BlockSpec((Ct, Cs), lambda n, o, j: (0, 0)),
                        pl.BlockSpec((Ct, 1), lambda n, o, j: (0, 0)),
                        pl.BlockSpec((1, Ct, thw), hw_idx),
                    ],
                    out_specs=out_spec,
                    scratch_shapes=[pltpu.VMEM((Ct, 1), jnp.float32)],
                ),
                compiler_params=compiler_params,
            )(xs, self.w, self.b, xt)
        else:
            kernel = functools.partial(
                _fea_mse_kernel, thw=thw, hw_valid=HW,
                n_inner=n_inner, needs_mask=needs_mask)
            partial_sums = pl.pallas_call(
                kernel,
                out_shape=out_shape,
                grid_spec=pltpu.PrefetchScalarGridSpec(
                    num_scalar_prefetch=0,
                    grid=grid,
                    in_specs=[
                        pl.BlockSpec((1, Cs, thw), hw_idx),
                        pl.BlockSpec((1, Ct, thw), hw_idx),
                    ],
                    out_specs=out_spec,
                    scratch_shapes=[pltpu.VMEM((Ct, 1), jnp.float32)],
                ),
                compiler_params=compiler_params,
            )(xs, xt)

        loss_sum = jnp.sum(partial_sums[:, :, 0, 0])
        return loss_sum / N * self.alpha_fea


# ----------------------------------------------------------------------------
# Reference (pure JAX) for sanity checking
# ----------------------------------------------------------------------------
def _ref_fea_loss(module, preds_S, preds_T):
    N = preds_T.shape[0]
    if module.w is not None:
        outs = jnp.einsum('oc,nchw->nohw', module.w, preds_S,
                          precision=lax.Precision.HIGHEST)
        outs = outs + module.b.reshape(1, -1, 1, 1)
    else:
        outs = preds_S
    return jnp.sum((outs - preds_T) ** 2) / N * module.alpha_fea


if __name__ == "__main__":
    key = jax.random.PRNGKey(0)
    k_s, k_t, k_w, k_s2 = jax.random.split(key, 4)

    N, Cs, Ct, H, W = 2, 4, 8, 16, 16
    preds_S = jax.random.normal(k_s, (N, Cs, H, W), dtype=jnp.float32)
    preds_T = jax.random.normal(k_t, (N, Ct, H, W), dtype=jnp.float32)

    # Align path (Cs != Ct -> 1x1 conv fused inside the kernel).
    loss_mod = FeaLossPallas(student_channels=Cs, teacher_channels=Ct,
                             alpha_fea=7e-05, key=k_w)
    loss = jax.block_until_ready(loss_mod(preds_S, preds_T))
    ref = _ref_fea_loss(loss_mod, preds_S, preds_T)
    assert jnp.allclose(loss, ref, rtol=1e-3, atol=1e-6), (loss, ref)

    # No-align path (equal channels -> pure sum-MSE).
    loss_mod2 = FeaLossPallas(student_channels=Ct, teacher_channels=Ct,
                              alpha_fea=7e-05)
    preds_S2 = jax.random.normal(k_s2, (N, Ct, H, W), dtype=jnp.float32)
    loss2 = jax.block_until_ready(loss_mod2(preds_S2, preds_T))
    ref2 = _ref_fea_loss(loss_mod2, preds_S2, preds_T)
    assert jnp.allclose(loss2, ref2, rtol=1e-3, atol=1e-6), (loss2, ref2)

    # Megacore path exercise: N == 1 with a ragged HW (mask + outer split).
    N3, H3, W3 = 1, 17, 23
    preds_S3 = jax.random.normal(k_s, (N3, Cs, H3, W3), dtype=jnp.float32)
    preds_T3 = jax.random.normal(k_t, (N3, Ct, H3, W3), dtype=jnp.float32)
    loss3 = jax.block_until_ready(loss_mod(preds_S3, preds_T3))
    ref3 = _ref_fea_loss(loss_mod, preds_S3, preds_T3)
    assert jnp.allclose(loss3, ref3, rtol=1e-3, atol=1e-6), (loss3, ref3)

    print("KERNEL_OK")
</pallas_src>

<mosaic_0001>
module attributes {stable_mosaic.version = 11 : i64} {
  func.func @_fea_align_kernel(%arg0: i32, %arg1: i32, %arg2: i32, %arg3: memref<1x4x256xf32, #tpu.memory_space<vmem>>, %arg4: memref<8x4xf32, #tpu.memory_space<vmem>>, %arg5: memref<8x1xf32, #tpu.memory_space<vmem>>, %arg6: memref<1x8x256xf32, #tpu.memory_space<vmem>>, %arg7: memref<1x1x1x128xf32, #tpu.memory_space<vmem>>, %arg8: memref<8x1xf32, #tpu.memory_space<vmem>>) attributes {dimension_semantics = [#tpu.dimension_semantics<parallel>, #tpu.dimension_semantics<parallel>, #tpu.dimension_semantics<arbitrary>], iteration_bounds = array<i64: 2, 1, 1>, scalar_prefetch = 0 : i64, scratch_operands = 1 : i64, tpu.core_type = #tpu.core_type<tc>, window_params = [{transform_indices = @transform_0, window_bounds = array<i64: 1, 4, 256>}, {pipeline_mode = #tpu.pipeline_mode<synchronous>, transform_indices = @transform_1, window_bounds = array<i64: 8, 4>}, {pipeline_mode = #tpu.pipeline_mode<synchronous>, transform_indices = @transform_2, window_bounds = array<i64: 8, 1>}, {transform_indices = @transform_3, window_bounds = array<i64: 1, 8, 256>}, {transform_indices = @transform_4, window_bounds = array<i64: 1, 1, 1, 128>}]} {
    %c0_i32 = arith.constant 0 : i32
    %0 = arith.cmpi eq, %arg2, %c0_i32 : i32
    %1 = arith.extui %0 : i1 to i32
    %c0_i32_0 = arith.constant 0 : i32
    %2 = arith.cmpi ne, %1, %c0_i32_0 : i32
    scf.if %2 {
      %cst_17 = arith.constant 0.000000e+00 : f32
      %22 = vector.broadcast %cst_17 : f32 to vector<8x1xf32>
      %c0_18 = arith.constant 0 : index
      %c0_19 = arith.constant 0 : index
      %23 = vector.load %arg8[%c0_18, %c0_19] : memref<8x1xf32, #tpu.memory_space<vmem>>, vector<8x1xf32>
      tpu.vector_store %arg8[%c0_18, %c0_19], %22 {strides = array<i32>} : memref<8x1xf32, #tpu.memory_space<vmem>>, vector<8x1xf32>,
    } else {
    }
    %c0 = arith.constant 0 : index
    %c0_1 = arith.constant 0 : index
    %c0_2 = arith.constant 0 : index
    %3 = vector.load %arg3[%c0, %c0_1, %c0_2] : memref<1x4x256xf32, #tpu.memory_space<vmem>>, vector<1x4x256xf32>
    %4 = vector.shape_cast %3 : vector<1x4x256xf32> to vector<4x256xf32>
    %c0_3 = arith.constant 0 : index
    %c0_4 = arith.constant 0 : index
    %5 = vector.load %arg4[%c0_3, %c0_4] : memref<8x4xf32, #tpu.memory_space<vmem>>, vector<8x4xf32>
    %cst = arith.constant dense<0.000000e+00> : vector<8x256xf32>
    %6 = tpu.matmul %5, %4, %cst {dimension_numbers = #tpu.dot_dimension_numbers<[1], [0], [0], [1], [0, 0, 1, 1], [], []>} : vector<8x4xf32>, vector<4x256xf32>, vector<8x256xf32> -> vector<8x256xf32>
    %c0_5 = arith.constant 0 : index
    %c0_6 = arith.constant 0 : index
    %7 = vector.load %arg5[%c0_5, %c0_6] : memref<8x1xf32, #tpu.memory_space<vmem>>, vector<8x1xf32>
    %8 = vector.broadcast %7 : vector<8x1xf32> to vector<8x256xf32>
    %9 = arith.addf %6, %8 : vector<8x256xf32>
    %c0_7 = arith.constant 0 : index
    %c0_8 = arith.constant 0 : index
    %c0_9 = arith.constant 0 : index
    %10 = vector.load %arg6[%c0_7, %c0_8, %c0_9] : memref<1x8x256xf32, #tpu.memory_space<vmem>>, vector<1x8x256xf32>
    %11 = vector.shape_cast %10 : vector<1x8x256xf32> to vector<8x256xf32>
    %12 = arith.subf %9, %11 : vector<8x256xf32>
    %c0_10 = arith.constant 0 : index
    %c0_11 = arith.constant 0 : index
    %13 = vector.load %arg8[%c0_10, %c0_11] : memref<8x1xf32, #tpu.memory_space<vmem>>, vector<8x1xf32>
    %14 = arith.mulf %12, %12 : vector<8x256xf32>
    %cst_12 = arith.constant dense<0.000000e+00> : vector<8xf32>
    %15 = vector.multi_reduction <add>, %14, %cst_12 [1] : vector<8x256xf32> to vector<8xf32>
    %16 = vector.shape_cast %15 : vector<8xf32> to vector<8x1xf32>
    %17 = arith.addf %13, %16 : vector<8x1xf32>
    %c0_13 = arith.constant 0 : index
    %c0_14 = arith.constant 0 : index
    %18 = vector.load %arg8[%c0_13, %c0_14] : memref<8x1xf32, #tpu.memory_space<vmem>>, vector<8x1xf32>
    tpu.vector_store %arg8[%c0_13, %c0_14], %17 {strides = array<i32>} : memref<8x1xf32, #tpu.memory_space<vmem>>, vector<8x1xf32>,
    %c0_i32_15 = arith.constant 0 : i32
    %19 = arith.cmpi eq, %arg2, %c0_i32_15 : i32
    %20 = arith.extui %19 : i1 to i32
    %c0_i32_16 = arith.constant 0 : i32
    %21 = arith.cmpi ne, %20, %c0_i32_16 : i32
    scf.if %21 {
      %c0_17 = arith.constant 0 : index
      %c0_18 = arith.constant 0 : index
      %22 = vector.load %arg8[%c0_17, %c0_18] : memref<8x1xf32, #tpu.memory_space<vmem>>, vector<8x1xf32>
      %23 = vector.shape_cast %22 : vector<8x1xf32> to vector<1x8x1xf32>
      %cst_19 = arith.constant dense<0.000000e+00> : vector<1xf32>
      %24 = vector.multi_reduction <add>, %23, %cst_19 [1, 2] : vector<1x8x1xf32> to vector<1xf32>
      %25 = vector.shape_cast %24 : vector<1xf32> to vector<1x1x1xf32>
      %26 = vector.extract %25[0, 0, 0] : f32 from vector<1x1x1xf32>
      %27 = vector.broadcast %26 : f32 to vector<1x1x1x128xf32>
      %c0_20 = arith.constant 0 : index
      %c0_21 = arith.constant 0 : index
      %c0_22 = arith.constant 0 : index
      %c0_23 = arith.constant 0 : index
      %28 = vector.load %arg7[%c0_20, %c0_21, %c0_22, %c0_23] : memref<1x1x1x128xf32, #tpu.memory_space<vmem>>, vector<1x1x1x128xf32>
      tpu.vector_store %arg7[%c0_20, %c0_21, %c0_22, %c0_23], %27 {strides = array<i32>} : memref<1x1x1x128xf32, #tpu.memory_space<vmem>>, vector<1x1x1x128xf32>,
    } else {
    }
    return
  }
  func.func @transform_0(%arg0: i32, %arg1: i32, %arg2: i32) -> (i32, i32, i32) {
    %c1_i32 = arith.constant 1 : i32
    %0 = arith.muli %arg1, %c1_i32 : i32
    %1 = arith.addi %0, %arg2 : i32
    %c0_i32 = arith.constant 0 : i32
    %c0_i32_0 = arith.constant 0 : i32
    return %arg0, %c0_i32, %1 : i32, i32, i32
  }
  func.func @transform_1(%arg0: i32, %arg1: i32, %arg2: i32) -> (i32, i32) {
    %c0_i32 = arith.constant 0 : i32
    %c0_i32_0 = arith.constant 0 : i32
    %c0_i32_1 = arith.constant 0 : i32
    return %c0_i32, %c0_i32_0 : i32, i32
  }
  func.func @transform_2(%arg0: i32, %arg1: i32, %arg2: i32) -> (i32, i32) {
    %c0_i32 = arith.constant 0 : i32
    %c0_i32_0 = arith.constant 0 : i32
    %c0_i32_1 = arith.constant 0 : i32
    return %c0_i32, %c0_i32_0 : i32, i32
  }
  func.func @transform_3(%arg0: i32, %arg1: i32, %arg2: i32) -> (i32, i32, i32) {
    %c1_i32 = arith.constant 1 : i32
    %0 = arith.muli %arg1, %c1_i32 : i32
    %1 = arith.addi %0, %arg2 : i32
    %c0_i32 = arith.constant 0 : i32
    %c0_i32_0 = arith.constant 0 : i32
    return %arg0, %c0_i32, %1 : i32, i32, i32
  }
  func.func @transform_4(%arg0: i32, %arg1: i32, %arg2: i32) -> (i32, i32, i32, i32) {
    %c0_i32 = arith.constant 0 : i32
    %c0_i32_0 = arith.constant 0 : i32
    %c0_i32_1 = arith.constant 0 : i32
    return %arg0, %arg1, %c0_i32, %c0_i32_0 : i32, i32, i32, i32
  }
}

</mosaic_0001>

<bundles_post_ra>
// kernel: tpu_custom_call.1
= control target key start
LH: loop header
LB: loop body
LE: loop exit
PB: predicated region body
PF: predicated region fallthrough
CT: control target
= control target key end

     0   :  { %9 = vsyncpa [#allocation4], 0  ;;  %s860_s0 = inlined_call_operand.vmem [shape: f32[2,4,256], index: 0, kind: input, shape index: {}]   ;;  %s861_s1 = inlined_call_operand.vmem [shape: f32[8,4], index: 1, kind: input, shape index: {}]   ;;  %s862_s2 = inlined_call_operand.vmem [shape: f32[8,1], index: 2, kind: input, shape index: {}]   ;;  %s863_s3 = inlined_call_operand.hbm [shape: f32[2,8,256], index: 3, kind: input, shape index: {}]   ;;  %s864_s4 = inlined_call_operand.hbm [shape: f32[2,1,1,128], index: 4, kind: output, shape index: {}]  }
   0x1   :  { %11 = vsyncpa [#allocation4 + $0x1], 0 }
   0x2   :  { %12 = vsyncpa [#allocation5], 0 }
   0x3   :  { %14 = vsyncpa [#allocation5 + $0x1], 0  ;;  %s725_s15 = smov 0   ;;  %s727_s16 = smov 0  }
   0x4   :  { %s729_s17 = smov 0   ;;  %s731_s18 = smov 0  }
   0x5   :  { %s733_s19 = smov 0   ;;  %s735_s20 = smov 0  }
   0x6 LB: > { %s498_s21 = sadd.s32 4294967295, %s696_s20   ;;  %s499_s22 = sadd.s32 4294967294, %s696_s20   ;;  %s696_s20 = sphi %s735_s20, %s20_s20   ;;  %s692_s19 = sphi %s733_s19, %s873_s19   ;;  %s688_s18 = sphi %s731_s18, %s872_s18   ;;  %s684_s17 = sphi %s729_s17, %s871_s17   ;;  %s680_s16 = sphi %s727_s16, %s870_s16   ;;  %s676_s15 = sphi %s725_s15, %s869_s15  }
   0x7   : > { %s39_s23 = sadd.s32 1, %s692_s19  ;;  %s122_s24 = sadd.s32 1, %s684_s17 }
   0x8   : > { %p41_p0 = scmp.ge.s32.totalorder %s39_s23, 2  ;;  %p129_p1 = scmp.ne.s32.totalorder %s684_s17, %s680_s16 }
   0x9   : > { %p130_p2 = scmp.eq.s32.totalorder %s696_s20, 0  ;;  %p135_p3 = scmp.ne.s32.totalorder %s680_s16, %s676_s15 }
   0xa   : > { %s875_s23 = smov (%p41_p0, %s39_s23), 0  ;;  %p136_p5 = scmp.eq.s32.totalorder %s498_s21, 0 }
   0xb   : > { %p766_p4 = por %p130_p2, %p129_p1  ;;  %s117_s26 = ssub.s32 %s692_s19, %s875_s23 }
   0xc   : > { %p161_p6 = scmp.eq.s32.totalorder %s498_s21, 1  ;;  %p120_p7 = scmp.eq.s32.totalorder %s117_s26, 0 }
   0xd   : > { %p772_p8 = por %p136_p5, %p135_p3  ;;  %p167_p10 = scmp.eq.s32.totalorder %s499_s22, 1 }
   0xe   : > { %p776_p9 = por %p161_p6, %p129_p1  ;;  %p501_p12 = scmp.ge.s32.totalorder %s696_s20, 2 }
   0xf   : > { %s781_s29 = scalar_select %p120_p7, %s684_s17, %s122_s24  }
  0x10   : > { %p783_p11 = por %p167_p10, %p135_p3  ;;  %p531_p13 = scmp.lt.s32.totalorder %s696_s20, 2 }
  0x11   : > { %s208_s5 = sand.u32 1, %s684_s17   ;;  %s515_s7 = sshll.u32 %s692_s19, 4 }
  0x12   : > { %s502_s6 = sshll.u32 %s208_s5, 4  ;;  %s220_s10 = scalar_lea.hbm %s863_s3, %s515_s7 }
  0x13   : > { %s212_s11 = scalar_lea.vmem [#allocation3], %s502_s6  ;;  %s222_s13 = sshll.u32 %s220_s10, 4  ;;  %s223_s13 = int_to_ptr.hbm [resolvable:$true] %s222_s13 }
  0x14   : > { %s224_s12 = sshll.u32 %s212_s11, 4  ;;  %p524_p0 = pnand %p531_p13, %p766_p4  ;;  %s225_s12 = int_to_ptr.vmem [resolvable:$true] %s224_s12 }
  0x15   : > { %p505_p1 = scmp.ge.s32.totalorder %s696_s20, 1  ;;  %p229_p2 = scmp.lt.s32.totalorder %s696_s20, 3 }
  0x16   : > { %s209_s14 = scalar_lea.sflag [#allocation4], %s208_s5 }
  0x17   : > { %526 = dma.hbm_to_vmem [thread:$0]  (!%p524_p0), %s223_s13, 256, %s225_s12, %s209_s14  }
  0x18   : > { %p230_p3 = pnand %p505_p1, %p229_p2 }
  0x19   : > { %s799_s21 = sand.u32 (!%p230_p3), 1, %s680_s16  }
  0x1a   : > { %233 = sbr.rel (%p230_p3) target bundleno = 491 (0x1eb), region = 36  ;;  %s506_s22 = sshll.u32 (!%p230_p3), %s799_s21, 4 }
  0x1b   : > { %s236_s24 = scalar_lea.sflag (!%p230_p3), [#allocation4], %s799_s21  ;;  %s239_s26 = scalar_lea.vmem (!%p230_p3), [#allocation3], %s506_s22 }
  0x1f   : > { %667 = dma.done.wait (%p772_p8), %s236_s24, 256  }
  0x20   : > { %669 = vsyncadd (%p772_p8), %s236_s24, 4294967040  ;;  %p276_p4 = scmp.lt.s32.totalorder %s688_s18, 1  ;;  %v698_v0 = vmov 0   ;;  %v296_v2 = vld [vmem:[%s862_s2] sm:$0xff]  ;;  %vm310_vm0 = vcmask 1043456   ;;  %vm306_vm1 = vcmask 31744   ;;  %s394_s14 = scalar_lea.hbm %s864_s4, %s688_s18 }
  0x21   : > { %583 = vset.pattern.permute.xlu0 %v698_v0  ;;  %v295_v3 = vld [vmem:[%s861_s1] sm:$0xff]  ;;  %vm292_vm2 = vcmask 7168   ;;  %v699_v6 = vmov 0.0   ;;  %v356_v11 = vld [vmem:[%s239_s26 + $0x8] sm:$0xff]  ;;  %s273_s22 = scalar_lea.vmem [#allocation6], %s799_s21 }
  0x22   : > { %s277_s25 = scalar_select %p276_p4, %s688_s18, 1  ;;  %299 = vperm.xlu0 %583, %v296_v2   ;;  %293 = vst.msk [vmem:[#allocation2] sm:$0xff] %vm292_vm2, %v699_v6  ;;  %v355_v9 = vld [vmem:[%s239_s26] sm:$0xff] }
  0x23   : > { %s396_s24 = sshll.u32 %s273_s22, 4  ;;  %s398_s26 = sshll.u32 %s394_s14, 4  ;;  %s397_s24 = int_to_ptr.vmem [resolvable:$true] %s396_s24  ;;  %s399_s26 = int_to_ptr.hbm [resolvable:$true] %s398_s26 }
  0x24   : > { %s516_s5 = sshll.u32 %s277_s25, 3  ;;  %s628_s6 = sshra.s32 %s399_s26, 4  ;;  %s629_s6 = int_to_ptr.hbm [resolvable:$true] %s628_s6 }
  0x25   : > { %s283_s8 = scalar_lea.vmem %s860_s0, %s516_s5  ;;  %s385_s5 = scalar_lea.sflag [#allocation5], %s799_s21 }
  0x26   : > { %v294_v1 = vld [vmem:[%s283_s8] sm:$0xff]  ;;  %s630_s7 = scalar_lea.hbm %s629_s6, 1  ;;  %s634_s18 = scalar_lea.hbm %s864_s4, 2 }
  0x27   : > { %303 = vst [vmem:[#allocation1] ss:$2 sm:$0xff] %v294_v1  ;;  %p631_p5 = scmp.ne.s32.totalorder %s629_s6, %s630_s7  ;;  %p635_p8 = scmp.lt.s32.totalorder %s629_s6, %s864_s4 }
  0x28   : > { %p636_p10 = scmp.lt.s32.totalorder %s634_s18, %s630_s7 }
  0x29   : > { %v359_v19 = vld [vmem:[#allocation2] sm:$0xff]  ;;  %p632_p6 = pnand %p631_p5, %p776_p9 }
  0x2a   : > { %p637_p13 = por %p636_p10, %p635_p8 }
  0x2b   : > { %p633_p7 = pneg %p632_p6 }
  0x2d   : > { %p638_p0 = pnand %p637_p13, %p633_p7 }
  0x2e   : > { %v304_v4 = vld.sshfl [vmem:[#allocation1] sm:$0xff pattern:$0x75316420]  ;;  %v305_v5 = vld.sshfl [vmem:[#allocation1 + $0x8] sm:$0xff pattern:$0x75316420] }
  0x2f   : > { %509 = vmatpush.msk.msra.mxu0 %vm310_vm0, %v304_v4  ;;  %511 = vmatpush.msk.msra.mxu1 %vm310_vm0, %v305_v5 }
  0x30   : > { %510 = vmatmul.msk.f32.vlgmr.msra.gmra.mxu0 %vm306_vm1, %v295_v3  ;;  %512 = vmatmul.msk.f32.vlgmr.msra.gmra.mxu1 %vm306_vm1, %v295_v3 }
  0x94   : > { %v300_v7 = vpop.permute.xlu0 %299 }
  0xad   : > { %v332_v8 = vpop.f32.mrf.mxu0  ;;  %v352_v10 = vpop.f32.mrf.mxu1 }
  0xae   : > { %v333_v12 = vadd.f32 %v332_v8, %v300_v7  ;;  %v353_v13 = vadd.f32 %v352_v10, %v300_v7 }
  0xb0   : > { %v357_v14 = vsub.f32 %v333_v12, %v355_v9  ;;  %v358_v15 = vsub.f32 %v353_v13, %v356_v11 }
  0xb2   : > { %v360_v16 = vmul.f32 %v357_v14, %v357_v14  ;;  %v361_v17 = vmul.f32 %v358_v15, %v358_v15 }
  0xb4   : > { %v362_v18 = vadd.f32 %v361_v17, %v360_v16 }
  0xb6   : > { %363 = vadd.xlane.f32.xlu0 %v362_v18 }
 0x129   : > { %v364_v20 = vpop.xlane.xlu0 %363 }
 0x12a   : > { %v365_v21 = vadd.f32 %v364_v20, %v359_v19 }
 0x12c   : > { %367 = vst.msk [vmem:[#allocation2] sm:$0xff] %vm292_vm2, %v365_v21 }
 0x133   : > { %v371_v22 = vld [vmem:[#allocation2] sm:$0xff] }
 0x134   : > { %v372_v23 = vsel %vm292_vm2, %v371_v22, 0.0 }
 0x135   : > { %373 = vadd.xlane.f32.xlu1 %v372_v23 }
 0x1a8   : > { %v374_v24 = vpop.xlane.xlu1 %373 }
 0x1a9   : > { %v375_v25 = vrot.slane %v374_v24, 4 }
 0x1ab   : > { %v376_v26 = vadd.f32 %v375_v25, %v374_v24 }
 0x1ad   : > { %v377_v27 = vrot.slane %v376_v26, 2 }
 0x1af   : > { %v378_v28 = vadd.f32 %v377_v27, %v376_v26 }
 0x1b1   : > { %v379_v29 = vrot.slane %v378_v28, 1 }
 0x1b3   : > { %v380_v30 = vadd.f32 %v379_v29, %v378_v28 }
 0x1b5   : > { %517 = vpush %v380_v30 }
 0x1e6   : > { %s518_s25 = spop %517 }
 0x1e7   : > { %v382_v31 = vstv %s518_s25 }
 0x1e8   : > { %383 = vst [vmem:[%s273_s22] sm:$0x1] %v382_v31 }
 0x1e9   : > { %641 = shalt.err (!%p638_p0)
}
 0x1ea   : > { %521 = dma.vmem_to_hbm [thread:$0]  (%p776_p9), %s397_s24, 16, %s399_s26, %s385_s5  }
 0x1eb PF: > { %s410_s21 = sand.u32 1, %s676_s15   ;;  %p528_p1 = pnand %p501_p12, %p783_p11 }
 0x1ec   : > { %s411_s11 = scalar_lea.sflag [#allocation5], %s410_s21 }
 0x1ed   : > { %p529_p2 = pneg %p528_p1 }
 0x1ef   : > { %671 = dma.done.wait (%p529_p2), %s411_s11, 16  }
 0x1f0   : > { %673 = vsyncadd (%p529_p2), %s411_s11, 4294967280  ;;  %s20_s20 = sadd.s32 1, %s696_s20   ;;  %s869_s15 = smov %s680_s16 }
 0x1f1   : > { %p17_p3 = scmp.ge.s32.totalorder %s20_s20, 4   ;;  %s870_s16 = smov %s684_s17 }
 0x1f2   : > { %s871_s17 = smov %s781_s29  ;;  %s872_s18 = smov %s692_s19 }
 0x1f3   : > { %s873_s19 = smov %s875_s23  ;;  %19 = sbr.rel (!%p17_p3) target bundleno = 6 (0x6), region = 92 }
 0x1f8   :  { %416 = vsyncpa [#allocation4], 1 }
 0x1f9   :  { %418 = vsyncpa [#allocation4 + $0x1], 1 }
 0x1fa   :  { %419 = vsyncpa [#allocation5], 1 }
 0x1fb   :  { %421 = vsyncpa [#allocation5 + $0x1], 1 }

</bundles_post_ra>
